<compile_context>
chip_gen: v5e
topology: v5e:2x2
jax: 0.10.0
libtpu: 0.0.40
codegen_flags: <defaults>
</compile_context>

<pallas_src>
import functools

import jax
import jax.numpy as jnp
from jax import lax
from jax.experimental import pallas as pl
from jax.experimental.pallas import tpu as pltpu


# ---------------------------------------------------------------------------
# helpers
# ---------------------------------------------------------------------------
def _selection_matrix(n_out, width, stride, dtype=jnp.float32):
    # one-hot (n_out, width): sel[o, w] = 1 iff w == o*stride  (strided row/col pick)
    oi = lax.broadcasted_iota(jnp.int32, (n_out, width), 0)
    wi = lax.broadcasted_iota(jnp.int32, (n_out, width), 1)
    return (wi == oi * stride).astype(dtype)


def _pick_block_m(m):
    # Many tiny (n x n) matrices per grid step; 64 * 16*16 f32 is only 64 KiB,
    # comfortably inside VMEM (incl. double-buffering) on v5e/v6e/v7x.
    return min(m, 64)


# ---------------------------------------------------------------------------
# Kernel 1 (fused): logm = U diag(log s) U^T  ->  MaxPool2d(k, stride)
# ---------------------------------------------------------------------------
def _logeig_maxpool_kernel(u_ref, s_ref, o_ref, *, kernel_size, stride, n_out):
    u = u_ref[...]                                       # (TM, n, n) eigenvectors
    s = jnp.log(s_ref[...])                              # (TM, 1, n) log-eigenvalues (EUP)
    tm, n, _ = u.shape
    scaled = u * s                                       # U @ diag(log s)  (column scaling)
    # logm[m] = scaled[m] @ u[m]^T  (batched MXU matmul over the eigen index)
    logm = lax.dot_general(scaled, u,
                           dimension_numbers=(((2,), (2,)), ((0,), (0,))),
                           preferred_element_type=jnp.float32)          # (TM, n, n)

    # ---- 2D max-pool, fully in VMEM, vectorized ----
    w = n - kernel_size + 1
    # row windows: elementwise max of kernel_size sublane-shifted views (VPU)
    rmax = logm[:, 0:w, :]
    for d in range(1, kernel_size):
        rmax = jnp.maximum(rmax, logm[:, d:d + w, :])                   # (TM, w, n)
    # strided row selection as a one-hot matmul (MXU has huge slack; avoids
    # strided slicing / per-window XLU reductions / concatenates).
    sel = _selection_matrix(n_out, w, stride)                           # (n_out, w)
    sel_b = jnp.broadcast_to(sel, (tm, n_out, w))                       # hoisted once
    rsel = lax.dot_general(sel_b, rmax,
                           dimension_numbers=(((2,), (1,)), ((0,), (0,))),
                           preferred_element_type=jnp.float32)          # (TM, n_out, n)
    # column windows: elementwise max of kernel_size lane-shifted views (VPU)
    cmax = rsel[:, :, 0:w]
    for d in range(1, kernel_size):
        cmax = jnp.maximum(cmax, rsel[:, :, d:d + w])                   # (TM, n_out, w)
    # strided column selection: cmax @ sel^T  (batched)
    pooled = lax.dot_general(cmax, sel_b,
                             dimension_numbers=(((2,), (2,)), ((0,), (0,))),
                             preferred_element_type=jnp.float32)        # (TM, n_out, n_out)
    o_ref[...] = pooled


def logeig_maxpool(v, s, *, kernel_size, stride):
    m, n, _ = v.shape
    n_out = (n - kernel_size) // stride + 1
    bm = _pick_block_m(m)
    v = v.astype(jnp.float32)
    s3 = s.reshape(m, 1, n).astype(jnp.float32)
    kern = functools.partial(_logeig_maxpool_kernel, kernel_size=kernel_size,
                             stride=stride, n_out=n_out)
    cost = pl.CostEstimate(
        flops=int(m * (2 * n * n * n
                       + 2 * n_out * n * (n - kernel_size + 1)
                       + 2 * n_out * n_out * (n - kernel_size + 1))),
        transcendentals=int(m * n),
        bytes_accessed=int(4 * m * (n * n + n + n_out * n_out)))
    return pl.pallas_call(
        kern,
        out_shape=jax.ShapeDtypeStruct((m, n_out, n_out), jnp.float32),
        grid=(pl.cdiv(m, bm),),
        in_specs=[pl.BlockSpec((bm, n, n), lambda i: (i, 0, 0)),
                  pl.BlockSpec((bm, 1, n), lambda i: (i, 0, 0))],
        out_specs=pl.BlockSpec((bm, n_out, n_out), lambda i: (i, 0, 0)),
        compiler_params=pltpu.CompilerParams(dimension_semantics=("parallel",)),
        cost_estimate=cost,
    )(v, s3)


# ---------------------------------------------------------------------------
# Kernel 2: ExpEig reconstruct  U diag(exp s) U^T  (batched)
# ---------------------------------------------------------------------------
def _expeig_kernel(u_ref, s_ref, o_ref):
    u = u_ref[...]                                       # (TM, n, n)
    s = jnp.exp(s_ref[...])                              # (TM, 1, n)
    scaled = u * s
    o_ref[...] = lax.dot_general(scaled, u,
                                 dimension_numbers=(((2,), (2,)), ((0,), (0,))),
                                 preferred_element_type=jnp.float32)


def expeig_reconstruct(v, s):
    m, n, _ = v.shape
    bm = _pick_block_m(m)
    v = v.astype(jnp.float32)
    s3 = s.reshape(m, 1, n).astype(jnp.float32)
    cost = pl.CostEstimate(flops=int(2 * m * n * n * n),
                           transcendentals=int(m * n),
                           bytes_accessed=int(4 * m * (2 * n * n + n)))
    return pl.pallas_call(
        _expeig_kernel,
        out_shape=jax.ShapeDtypeStruct((m, n, n), jnp.float32),
        grid=(pl.cdiv(m, bm),),
        in_specs=[pl.BlockSpec((bm, n, n), lambda i: (i, 0, 0)),
                  pl.BlockSpec((bm, 1, n), lambda i: (i, 0, 0))],
        out_specs=pl.BlockSpec((bm, n, n), lambda i: (i, 0, 0)),
        compiler_params=pltpu.CompilerParams(dimension_semantics=("parallel",)),
        cost_estimate=cost,
    )(v, s3)


# ---------------------------------------------------------------------------
# Full forward: LogEig -> MaxPool2d(4, stride) -> ExpEig
# ---------------------------------------------------------------------------
def max_pooling_forward(x, stride, kernel_size=4):
    b, c, n, _ = x.shape
    xm = x.reshape(b * c, n, n).astype(jnp.float32)
    # TODO(synk): symmetric eigendecomposition has no Pallas equivalent; done in plain JAX.
    w, v = jnp.linalg.eigh(xm)
    pooled = logeig_maxpool(v, w, kernel_size=kernel_size, stride=stride)  # LogEig + pool (fused)
    # pooling a symmetric matrix with mirrored windows stays symmetric (up to ulp);
    # jnp.linalg.eigh symmetrizes its input anyway, so no explicit 0.5*(p+p^T).
    w2, v2 = jnp.linalg.eigh(pooled)
    out = expeig_reconstruct(v2, w2)                                        # ExpEig
    n_out = pooled.shape[-1]
    return out.reshape(b, c, n_out, n_out)


# Pure-JAX reference for validation
def _reference_forward(x, stride, kernel_size=4):
    b, c, n, _ = x.shape
    xm = x.reshape(b * c, n, n).astype(jnp.float32)
    w, v = jnp.linalg.eigh(xm)
    logm = jnp.einsum('mij,mj,mkj->mik', v, jnp.log(w), v)
    pooled = lax.reduce_window(logm, -jnp.inf, lax.max,
                               window_dimensions=(1, kernel_size, kernel_size),
                               window_strides=(1, stride, stride),
                               padding='VALID')
    w2, v2 = jnp.linalg.eigh(pooled)
    out = jnp.einsum('mij,mj,mkj->mik', v2, jnp.exp(w2), v2)
    n_out = pooled.shape[-1]
    return out.reshape(b, c, n_out, n_out)


if __name__ == "__main__":
    B, C, N = 2, 4, 16
    STRIDE = 2
    key = jax.random.PRNGKey(0)
    a = jax.random.normal(key, (B, C, N, N), dtype=jnp.float32)
    # Deterministic SPD input: A A^T / (4N) + I  (well-conditioned, positive spectrum)
    x = jnp.einsum('bcij,bckj->bcik', a, a) / (4.0 * N) + jnp.eye(N, dtype=jnp.float32)

    out = max_pooling_forward(x, STRIDE)
    out = jax.block_until_ready(out)

    assert out.shape == (B, C, 7, 7), out.shape
    ref = _reference_forward(x, STRIDE)
    if not bool(jnp.allclose(out, ref, rtol=1e-3, atol=1e-3)):
        raise AssertionError(
            f"mismatch vs reference: max abs err={float(jnp.max(jnp.abs(out - ref)))}")
    print("KERNEL_OK")
</pallas_src>

<mosaic_0001>
module attributes {stable_mosaic.version = 11 : i64} {
  func.func @_logeig_maxpool_kernel(%arg0: i32, %arg1: memref<8x16x16xf32, #tpu.memory_space<vmem>>, %arg2: memref<8x1x16xf32, #tpu.memory_space<vmem>>, %arg3: memref<8x7x7xf32, #tpu.memory_space<vmem>>) attributes {dimension_semantics = [#tpu.dimension_semantics<parallel>], iteration_bounds = array<i64: 1>, scalar_prefetch = 0 : i64, scratch_operands = 0 : i64, tpu.core_type = #tpu.core_type<tc>, window_params = [{transform_indices = @transform_0, window_bounds = array<i64: 8, 16, 16>}, {transform_indices = @transform_1, window_bounds = array<i64: 8, 1, 16>}, {transform_indices = @transform_2, window_bounds = array<i64: 8, 7, 7>}]} {
    %c0 = arith.constant 0 : index
    %c0_0 = arith.constant 0 : index
    %c0_1 = arith.constant 0 : index
    %0 = vector.load %arg1[%c0, %c0_0, %c0_1] : memref<8x16x16xf32, #tpu.memory_space<vmem>>, vector<8x16x16xf32>
    %c0_2 = arith.constant 0 : index
    %c0_3 = arith.constant 0 : index
    %c0_4 = arith.constant 0 : index
    %1 = vector.load %arg2[%c0_2, %c0_3, %c0_4] : memref<8x1x16xf32, #tpu.memory_space<vmem>>, vector<8x1x16xf32>
    %2 = math.log %1 : vector<8x1x16xf32>
    %3 = vector.broadcast %2 : vector<8x1x16xf32> to vector<8x16x16xf32>
    %4 = arith.mulf %0, %3 : vector<8x16x16xf32>
    %cst = arith.constant dense<0.000000e+00> : vector<8x16x16xf32>
    %5 = tpu.matmul %4, %0, %cst {dimension_numbers = #tpu.dot_dimension_numbers<[2], [2], [1], [1], [0, 0, 0, 1, 1, 1], [0], [0]>} : vector<8x16x16xf32>, vector<8x16x16xf32>, vector<8x16x16xf32> -> vector<8x16x16xf32>
    %6 = vector.extract_strided_slice %5 {offsets = [0, 0, 0], sizes = [8, 13, 16], strides = [1, 1, 1]} : vector<8x16x16xf32> to vector<8x13x16xf32>
    %7 = vector.extract_strided_slice %5 {offsets = [0, 1, 0], sizes = [8, 13, 16], strides = [1, 1, 1]} : vector<8x16x16xf32> to vector<8x13x16xf32>
    %8 = arith.maximumf %6, %7 : vector<8x13x16xf32>
    %9 = vector.extract_strided_slice %5 {offsets = [0, 2, 0], sizes = [8, 13, 16], strides = [1, 1, 1]} : vector<8x16x16xf32> to vector<8x13x16xf32>
    %10 = arith.maximumf %8, %9 : vector<8x13x16xf32>
    %11 = vector.extract_strided_slice %5 {offsets = [0, 3, 0], sizes = [8, 13, 16], strides = [1, 1, 1]} : vector<8x16x16xf32> to vector<8x13x16xf32>
    %12 = arith.maximumf %10, %11 : vector<8x13x16xf32>
    %13 = tpu.iota {dimensions = array<i32: 0>} : vector<7x13xi32>
    %14 = tpu.iota {dimensions = array<i32: 1>} : vector<7x13xi32>
    %c2_i32 = arith.constant 2 : i32
    %15 = vector.broadcast %c2_i32 : i32 to vector<7x13xi32>
    %16 = arith.muli %13, %15 : vector<7x13xi32>
    %17 = arith.cmpi eq, %14, %16 : vector<7x13xi32>
    %18 = arith.extui %17 : vector<7x13xi1> to vector<7x13xi32>
    %19 = arith.sitofp %18 : vector<7x13xi32> to vector<7x13xf32>
    %20 = vector.shape_cast %19 : vector<7x13xf32> to vector<1x7x13xf32>
    %21 = vector.broadcast %20 : vector<1x7x13xf32> to vector<8x7x13xf32>
    %cst_5 = arith.constant dense<0.000000e+00> : vector<8x7x16xf32>
    %22 = tpu.matmul %21, %12, %cst_5 {dimension_numbers = #tpu.dot_dimension_numbers<[2], [1], [1], [2], [0, 0, 0, 1, 1, 2], [0], [0]>} : vector<8x7x13xf32>, vector<8x13x16xf32>, vector<8x7x16xf32> -> vector<8x7x16xf32>
    %23 = vector.extract_strided_slice %22 {offsets = [0, 0, 0], sizes = [8, 7, 13], strides = [1, 1, 1]} : vector<8x7x16xf32> to vector<8x7x13xf32>
    %24 = vector.extract_strided_slice %22 {offsets = [0, 0, 1], sizes = [8, 7, 13], strides = [1, 1, 1]} : vector<8x7x16xf32> to vector<8x7x13xf32>
    %25 = arith.maximumf %23, %24 : vector<8x7x13xf32>
    %26 = vector.extract_strided_slice %22 {offsets = [0, 0, 2], sizes = [8, 7, 13], strides = [1, 1, 1]} : vector<8x7x16xf32> to vector<8x7x13xf32>
    %27 = arith.maximumf %25, %26 : vector<8x7x13xf32>
    %28 = vector.extract_strided_slice %22 {offsets = [0, 0, 3], sizes = [8, 7, 13], strides = [1, 1, 1]} : vector<8x7x16xf32> to vector<8x7x13xf32>
    %29 = arith.maximumf %27, %28 : vector<8x7x13xf32>
    %cst_6 = arith.constant dense<0.000000e+00> : vector<8x7x7xf32>
    %30 = tpu.matmul %29, %21, %cst_6 {dimension_numbers = #tpu.dot_dimension_numbers<[2], [2], [1], [1], [0, 0, 0, 1, 1, 1], [0], [0]>} : vector<8x7x13xf32>, vector<8x7x13xf32>, vector<8x7x7xf32> -> vector<8x7x7xf32>
    %c0_7 = arith.constant 0 : index
    %c0_8 = arith.constant 0 : index
    %c0_9 = arith.constant 0 : index
    %31 = vector.load %arg3[%c0_7, %c0_8, %c0_9] : memref<8x7x7xf32, #tpu.memory_space<vmem>>, vector<8x7x7xf32>
    tpu.vector_store %arg3[%c0_7, %c0_8, %c0_9], %30 {strides = array<i32>} : memref<8x7x7xf32, #tpu.memory_space<vmem>>, vector<8x7x7xf32>,
    return
  }
  func.func @transform_0(%arg0: i32) -> (i32, i32, i32) {
    %c0_i32 = arith.constant 0 : i32
    %c0_i32_0 = arith.constant 0 : i32
    %c0_i32_1 = arith.constant 0 : i32
    return %arg0, %c0_i32, %c0_i32_0 : i32, i32, i32
  }
  func.func @transform_1(%arg0: i32) -> (i32, i32, i32) {
    %c0_i32 = arith.constant 0 : i32
    %c0_i32_0 = arith.constant 0 : i32
    %c0_i32_1 = arith.constant 0 : i32
    return %arg0, %c0_i32, %c0_i32_0 : i32, i32, i32
  }
  func.func @transform_2(%arg0: i32) -> (i32, i32, i32) {
    %c0_i32 = arith.constant 0 : i32
    %c0_i32_0 = arith.constant 0 : i32
    %c0_i32_1 = arith.constant 0 : i32
    return %arg0, %c0_i32, %c0_i32_0 : i32, i32, i32
  }
}

</mosaic_0001>

<bundles_post_ra>
// kernel: tpu_custom_call.1
= control target key start
LH: loop header
LB: loop body
LE: loop exit
PB: predicated region body
PF: predicated region fallthrough
CT: control target
= control target key end

     0   :  { %7 = vsyncpa [#allocation3], 0  ;;  %s1482_s0 = inlined_call_operand.hbm [shape: f32[8,16,16], index: 0, kind: input, shape index: {}]   ;;  %s1483_s1 = inlined_call_operand.hbm [shape: f32[8,1,16], index: 1, kind: input, shape index: {}]   ;;  %s1484_s2 = inlined_call_operand.vmem [shape: f32[8,7,7], index: 2, kind: output, shape index: {}]  }
   0x1   :  { %s13_s11 = sshll.u32 %s1482_s0, 4  ;;  %s14_s11 = int_to_ptr.hbm [resolvable:$true] %s13_s11 }
   0x2   :  { %8 = vsyncpa [#allocation5], 0  ;;  %s1233_s12 = smov [#allocation2]   ;;  %s26_s16 = sshll.u32 %s1483_s1, 4  ;;  %s27_s16 = int_to_ptr.hbm [resolvable:$true] %s26_s16 }
   0x3   :  { %s15_s13 = sshll.u32 %s1233_s12, 4  ;;  %s1234_s17 = smov 128   ;;  %s16_s13 = int_to_ptr.vmem [resolvable:$true] %s15_s13 }
   0x4   :  { %s1235_s18 = smov 8   ;;  %s1236_s19 = smov [#allocation4]  }
   0x5   :  { %21 = dma.hbm_to_vmem [thread:$0]  %s14_s11, 2048, %s16_s13, [#allocation3], %s1234_s17, %s1234_s17, %s1235_s18  }
   0x6   :  { %s28_s20 = sshll.u32 %s1236_s19, 4  ;;  %s1237_s21 = smov 16   ;;  %s29_s20 = int_to_ptr.vmem [resolvable:$true] %s28_s20 }
   0x7   :  { %s1238_s22 = smov 1  }
   0x8   :  { %34 = dma.hbm_to_vmem [thread:$0]  %s27_s16, 128, %s29_s20, [#allocation5], %s1237_s21, %s1237_s21, %s1238_s22  }
   0x9   :  { %1229 = dma.done.wait [#allocation3], 2048  }
   0xa   :  { %1230 = vsyncadd [#allocation3], 4294965248 }
   0xb   :  { %1231 = dma.done.wait [#allocation5], 128  }
   0xc   :  { %1232 = vsyncadd [#allocation5], 4294967168  ;;  %vm123_vm0 = vcmask 130048   ;;  %v1264_v0 = vld [vmem:[#allocation2 + $0x8] sm:$0xff]  ;;  %v59_v1 = vld [vmem:[#allocation4] sm:$0x1] }
   0xd   :  { %v1266_v2 = vld [vmem:[#allocation2 + $0x18] sm:$0xff]  ;;  %1165 = vlog2.f32 %v59_v1  ;;  %1090 = vmatpush.xpose.msk.msra.mxu0 %vm123_vm0, %v1264_v0  ;;  %v60_v3 = vld [vmem:[#allocation4 + $0x1] sm:$0x1]  ;;  %v1272_v4 = vld [vmem:[#allocation2 + $0x28] sm:$0xff]  ;;  %vm534_vm2 = vcmask 1044480   ;;  %vm420_vm3 = vcmask 1046528  }
   0xe   :  { %1094 = vmatpush.xpose.msk.msra.mxu1 %vm123_vm0, %v1266_v2  ;;  %v61_v5 = vld [vmem:[#allocation4 + $0x2] sm:$0x1]  ;;  %1167 = vlog2.f32 %v60_v3  ;;  %1098 = vmatpush.xpose.msk.msra.mxu2 %vm123_vm0, %v1272_v4  ;;  %v1276_v6 = vld [vmem:[#allocation2 + $0x38] sm:$0xff]  ;;  %v62_v7 = vld [vmem:[#allocation4 + $0x3] sm:$0x1]  ;;  %vm477_vm4 = vcmask 1045504  }
   0xf   :  { %v43_v8 = vld [vmem:[#allocation2] sm:$0xff]  ;;  %1169 = vlog2.f32 %v61_v5  ;;  %1102 = vmatpush.xpose.msk.msra.mxu3 %vm123_vm0, %v1276_v6  ;;  %v45_v9 = vld [vmem:[#allocation2 + $0x10] sm:$0xff]  ;;  %v1280_v12 = vld [vmem:[#allocation2 + $0x48] sm:$0xff]  ;;  %vm599_vm5 = vcmask 105472   ;;  %s1240_s0 = smov 127   ;;  %s1241_s1 = smov 126  }
  0x10   :  { %v47_v10 = vld [vmem:[#allocation2 + $0x20] sm:$0xff]  ;;  %1171 = vlog2.f32 %v62_v7  ;;  %v49_v11 = vld [vmem:[#allocation2 + $0x30] sm:$0xff]  ;;  %v1284_v13 = vld [vmem:[#allocation2 + $0x78] sm:$0xff]  ;;  %s1242_s23 = smov 125   ;;  %vm1075_vm6 = vcmask 55296  }
  0x11   :  { %1091 = vmatpush.xpose.msk.msra.mxu0 %vm123_vm0, %v43_v8  ;;  %v1286_v14 = vld [vmem:[#allocation2 + $0x68] sm:$0xff]  ;;  %v63_v15 = vld [vmem:[#allocation4 + $0x4] sm:$0x1]  ;;  %v1291_v16 = vld [vmem:[#allocation2 + $0x58] sm:$0xff] }
  0x12   :  { %1095 = vmatpush.xpose.msk.msra.mxu1 %vm123_vm0, %v45_v9  ;;  %1099 = vmatpush.xpose.msk.msra.mxu2 %vm123_vm0, %v47_v10  ;;  %v64_v18 = vld [vmem:[#allocation4 + $0x5] sm:$0x1]  ;;  %v65_v22 = vld [vmem:[#allocation4 + $0x6] sm:$0x1]  ;;  %v66_v26 = vld [vmem:[#allocation4 + $0x7] sm:$0x1]  ;;  %1173 = vlog2.f32 %v63_v15 }
  0x13   :  { %v1166_v17 = vpop.eup %1165  ;;  %1103 = vmatpush.xpose.msk.msra.mxu3 %vm123_vm0, %v49_v11  ;;  %v51_v19 = vld [vmem:[#allocation2 + $0x40] sm:$0xff]  ;;  %v57_v27 = vld [vmem:[#allocation2 + $0x70] sm:$0xff]  ;;  %1175 = vlog2.f32 %v64_v18 }
  0x14   :  { %v1168_v20 = vpop.eup %1167  ;;  %v68_v21 = vmul.f32 0.6931472, %v1166_v17  ;;  %v55_v23 = vld [vmem:[#allocation2 + $0x60] sm:$0xff]  ;;  %v53_v28 = vld [vmem:[#allocation2 + $0x50] sm:$0xff]  ;;  %1177 = vlog2.f32 %v65_v22 }
  0x15   :  { %1106 = vmatpush.xpose.msk.msrb.mxu0 %vm123_vm0, %v1280_v12  ;;  %v1170_v24 = vpop.eup %1169  ;;  %v70_v25 = vmul.f32 0.6931472, %v1168_v20  ;;  %1179 = vlog2.f32 %v66_v26 }
  0x16   :  { %1114 = vmatpush.xpose.msk.msrb.mxu2 %vm123_vm0, %v1286_v14  ;;  %1110 = vmatpush.xpose.msk.msrb.mxu1 %vm123_vm0, %v1291_v16  ;;  %v1172_v29 = vpop.eup %1171  ;;  %v91_v30 = vperm.slane %v68_v21, 0  ;;  %v72_v31 = vmul.f32 0.6931472, %v1170_v24 }
  0x17   :  { %1118 = vmatpush.xpose.msk.msrb.mxu3 %vm123_vm0, %v1284_v13  ;;  %v92_v32 = vperm.slane %v70_v25, 0  ;;  %v74_v33 = vmul.f32 0.6931472, %v1172_v29 }
  0x18   :  { %v93_v34 = vperm.slane %v72_v31, 0  ;;  %v107_v35 = vmul.f32 %v91_v30, %v43_v8  ;;  %v1174_v39 = vpop.eup %1173  ;;  %v108_v44 = vmul.f32 %v91_v30, %v1264_v0  ;;  %v591_v0 = vlaneseq }
  0x19   :  { %1107 = vmatpush.xpose.msk.msrb.mxu0 %vm123_vm0, %v51_v19  ;;  %v94_v36 = vperm.slane %v74_v33, 0  ;;  %v109_v37 = vmul.f32 %v92_v32, %v45_v9  ;;  %v1176_v41 = vpop.eup %1175  ;;  %v76_v45 = vmul.f32 0.6931472, %v1174_v39  ;;  %v110_v46 = vmul.f32 %v92_v32, %v1266_v2 }
  0x1a   :  { %1115 = vmatpush.xpose.msk.msrb.mxu2 %vm123_vm0, %v55_v23  ;;  %1111 = vmatpush.xpose.msk.msrb.mxu1 %vm123_vm0, %v53_v28  ;;  %v111_v38 = vmul.f32 %v93_v34, %v47_v10  ;;  %v1178_v42 = vpop.eup %1177  ;;  %v78_v47 = vmul.f32 0.6931472, %v1176_v41  ;;  %v112_v48 = vmul.f32 %v93_v34, %v1272_v4  ;;  %v592_v1 = vshrl.u32 %v591_v0, 7 }
  0x1b   :  { %1119 = vmatpush.xpose.msk.msrb.mxu3 %vm123_vm0, %v57_v27  ;;  %1092 = vmatmul.msk.f32.vlgmr.msra.gmra.mxu0 %vm123_vm0, %v107_v35  ;;  %v113_v40 = vmul.f32 %v94_v36, %v49_v11  ;;  %v1180_v43 = vpop.eup %1179  ;;  %v80_v49 = vmul.f32 0.6931472, %v1178_v42  ;;  %v114_v50 = vmul.f32 %v94_v36, %v1276_v6  ;;  %v95_v52 = vperm.slane %v76_v45, 0 }
  0x1c   :  { %1096 = vmatmul.msk.f32.vlgmr.msra.gmra.mxu1 %vm123_vm0, %v109_v37  ;;  %1100 = vmatmul.msk.f32.vlgmr.msra.gmra.mxu2 %vm123_vm0, %v111_v38  ;;  %v82_v51 = vmul.f32 0.6931472, %v1180_v43  ;;  %v96_v53 = vperm.slane %v78_v47, 0  ;;  %v594_v4 = vand.u32 127, %v591_v0  ;;  %v595_v5 = vmul.u32 2, %v592_v1 }
  0x1d   :  { %1104 = vmatmul.msk.f32.vlgmr.msra.gmra.mxu3 %vm123_vm0, %v113_v40  ;;  %v97_v54 = vperm.slane %v80_v49, 0  ;;  %v115_v56 = vmul.f32 %v95_v52, %v51_v19  ;;  %v116_v60 = vmul.f32 %v95_v52, %v1280_v12 }
  0x1e   :  { %v98_v55 = vperm.slane %v82_v51, 0  ;;  %v117_v57 = vmul.f32 %v96_v53, %v53_v28  ;;  %v118_v61 = vmul.f32 %v96_v53, %v1291_v16  ;;  %vm596_vm1 = vcmp.eq.s32.totalorder %v594_v4, %v595_v5 }
  0x1f   :  { %v119_v58 = vmul.f32 %v97_v54, %v55_v23  ;;  %v120_v62 = vmul.f32 %v97_v54, %v1286_v14 }
  0x20   :  { %v121_v59 = vmul.f32 %v98_v55, %v57_v27  ;;  %v122_v63 = vmul.f32 %v98_v55, %v1284_v13  ;;  %v1239_v13 = vmov 0.0  }
  0x21   :  { %v1332_v14 = vsel %vm596_vm1, 1.0, %v1239_v13 }
  0x23   :  { %1093 = vmatmul.msk.f32.gmra.mxu0 %vm123_vm0, %v108_v44 }
  0x24   :  { %1097 = vmatmul.msk.f32.gmra.mxu1 %vm123_vm0, %v110_v46  ;;  %1101 = vmatmul.msk.f32.gmra.mxu2 %vm123_vm0, %v112_v48 }
  0x25   :  { %1105 = vmatmul.msk.f32.gmra.mxu3 %vm123_vm0, %v114_v50 }
  0x2b   :  { %1108 = vmatmul.msk.f32.vlgmr.msrb.gmra.mxu0 %vm123_vm0, %v115_v56 }
  0x2c   :  { %1112 = vmatmul.msk.f32.vlgmr.msrb.gmra.mxu1 %vm123_vm0, %v117_v57  ;;  %1116 = vmatmul.msk.f32.vlgmr.msrb.gmra.mxu2 %vm123_vm0, %v119_v58 }
  0x2d   :  { %1120 = vmatmul.msk.f32.vlgmr.msrb.gmra.mxu3 %vm123_vm0, %v121_v59 }
  0x33   :  { %1109 = vmatmul.msk.f32.gmra.mxu0 %vm123_vm0, %v116_v60 }
  0x34   :  { %1113 = vmatmul.msk.f32.gmra.mxu1 %vm123_vm0, %v118_v61  ;;  %1117 = vmatmul.msk.f32.gmra.mxu2 %vm123_vm0, %v120_v62 }
  0x35   :  { %1121 = vmatmul.msk.f32.gmra.mxu3 %vm123_vm0, %v122_v63 }
  0x98   :  { %v153_v2 = vpop.f32.mrf.mxu0 }
  0x99   :  { %v188_v3 = vpop.f32.mrf.mxu1  ;;  %v421_v8 = vrot.slane %v153_v2, 1  ;;  %v478_v9 = vrot.slane %v153_v2, 2  ;;  %v535_v15 = vrot.slane %v153_v2, 3 }
  0x9a   :  { %v424_v16 = vrot.slane %v188_v3, 1  ;;  %v481_v17 = vrot.slane %v188_v3, 2  ;;  %v538_v19 = vrot.slane %v188_v3, 3 }
  0x9f   :  { %v1328_v6 = vpop.f32.mrf.mxu2 }
  0xa0   :  { %v156_v7 = vpop.f32.mrf.mxu0  ;;  %v1330_v10 = vpop.f32.mrf.mxu3  ;;  %v427_v20 = vrot.slane %v1328_v6, 1  ;;  %v484_v23 = vrot.slane %v1328_v6, 2  ;;  %v541_v31 = vrot.slane %v1328_v6, 3 }
  0xa1   :  { %v422_v11 = vrot.slane %v156_v7, 1  ;;  %v191_v12 = vpop.f32.mrf.mxu1  ;;  %v479_v18 = vrot.slane %v156_v7, 2  ;;  %v536_v24 = vrot.slane %v156_v7, 3  ;;  %v430_v32 = vrot.slane %v1330_v10, 1 }
  0xa2   :  { %v425_v22 = vrot.slane %v191_v12, 1  ;;  %v482_v25 = vrot.slane %v191_v12, 2  ;;  %v539_v29 = vrot.slane %v191_v12, 3  ;;  %v487_v39 = vrot.slane %v1330_v10, 2 }
  0xa3   :  { %v462_v21 = vmax.f32 %v156_v7, %v422_v11  ;;  %v423_v26 = vsel %vm420_vm3, %v421_v8, %v422_v11  ;;  %v480_v33 = vsel %vm477_vm4, %v478_v9, %v479_v18  ;;  %v544_v40 = vrot.slane %v1330_v10, 3 }
  0xa4   :  { %v464_v28 = vmax.f32 %v191_v12, %v425_v22  ;;  %v461_v30 = vmax.f32 %v153_v2, %v423_v26  ;;  %v426_v34 = vsel %vm420_vm3, %v424_v16, %v425_v22  ;;  %v537_v42 = vsel %vm534_vm2, %v535_v15, %v536_v24 }
  0xa5   :  { %v519_v27 = vmax.f32 %v462_v21, %v479_v18  ;;  %v463_v38 = vmax.f32 %v188_v3, %v426_v34  ;;  %v483_v43 = vsel %vm477_vm4, %v481_v17, %v482_v25  ;;  %v540_v49 = vsel %vm534_vm2, %v538_v19, %v539_v29 }
  0xa6   :  { %v521_v36 = vmax.f32 %v464_v28, %v482_v25  ;;  %v518_v37 = vmax.f32 %v461_v30, %v480_v33 }
  0xa7   :  { %v576_v35 = vmax.f32 %v519_v27, %v536_v24  ;;  %v226_v41 = vpop.f32.mrf.mxu2  ;;  %v520_v57 = vmax.f32 %v463_v38, %v483_v43 }
  0xa8   :  { %v1345_v44 = vpop.f32.mrf.mxu0  ;;  %v578_v45 = vmax.f32 %v521_v36, %v539_v29  ;;  %v428_v46 = vrot.slane %v226_v41, 1  ;;  %v485_v47 = vrot.slane %v226_v41, 2  ;;  %v261_v48 = vpop.f32.mrf.mxu3  ;;  %v575_v54 = vmax.f32 %v518_v37, %v537_v42 }
  0xa9   :  { %1123 = vmatpush.msk.msra.mxu0 %vm534_vm2, %v576_v35  ;;  %v1349_v50 = vpop.f32.mrf.mxu1  ;;  %v431_v51 = vrot.slane %v261_v48, 1  ;;  %v488_v52 = vrot.slane %v261_v48, 2  ;;  %v545_v53 = vrot.slane %v261_v48, 3  ;;  %v542_v56 = vrot.slane %v226_v41, 3 }
  0xaa   :  { %v466_v55 = vmax.f32 %v226_v41, %v428_v46  ;;  %1125 = vmatpush.msk.msra.mxu1 %vm534_vm2, %v578_v45  ;;  %v429_v58 = vsel %vm420_vm3, %v427_v20, %v428_v46  ;;  %v486_v61 = vsel %vm477_vm4, %v484_v23, %v485_v47  ;;  %v577_v0 = vmax.f32 %v520_v57, %v540_v49 }
  0xab   :  { %v468_v59 = vmax.f32 %v261_v48, %v431_v51  ;;  %621 = vmatpush.msra.mxu0 %v575_v54  ;;  %v465_v60 = vmax.f32 %v1328_v6, %v429_v58  ;;  %v432_v62 = vsel %vm420_vm3, %v430_v32, %v431_v51  ;;  %v489_v2 = vsel %vm477_vm4, %v487_v39, %v488_v52 }
  0xac   :  { %v523_v63 = vmax.f32 %v466_v55, %v485_v47  ;;  %1124 = vmatmul.msk.f32.vlgmr.msra.gmra.mxu0 %vm599_vm5, %v1332_v14  ;;  %v467_v1 = vmax.f32 %v1330_v10, %v432_v62  ;;  %v546_v5 = vsel %vm534_vm2, %v544_v40, %v545_v53  ;;  %644 = vmatpush.msra.mxu1 %v577_v0  ;;  %v433_v15 = vrot.slane %v1345_v44, 1 }
  0xad   :  { %v525_v3 = vmax.f32 %v468_v59, %v488_v52  ;;  %v522_v4 = vmax.f32 %v465_v60, %v486_v61  ;;  %v543_v6 = vsel %vm534_vm2, %v541_v31, %v542_v56  ;;  %1126 = vmatmul.msk.f32.vlgmr.msra.gmra.mxu1 %vm599_vm5, %v1332_v14  ;;  %v490_v16 = vrot.slane %v1345_v44, 2 }
  0xae   :  { %v580_v7 = vmax.f32 %v523_v63, %v542_v56  ;;  %v524_v8 = vmax.f32 %v467_v1, %v489_v2  ;;  %v547_v19 = vrot.slane %v1345_v44, 3  ;;  %v436_v20 = vrot.slane %v1349_v50, 1 }
  0xaf   :  { %v582_v9 = vmax.f32 %v525_v3, %v545_v53  ;;  %v579_v11 = vmax.f32 %v522_v4, %v543_v6  ;;  %v1364_v12 = vpop.f32.mrf.mxu2  ;;  %v493_v21 = vrot.slane %v1349_v50, 2  ;;  %v550_v22 = vrot.slane %v1349_v50, 3 }
  0xb0   :  { %v296_v13 = vpop.f32.mrf.mxu0  ;;  %1127 = vmatpush.msk.msra.mxu2 %vm534_vm2, %v580_v7  ;;  %v581_v10 = vmax.f32 %v524_v8, %v546_v5  ;;  %v1369_v17 = vpop.f32.mrf.mxu3  ;;  %v439_v23 = vrot.slane %v1364_v12, 1  ;;  %v496_v27 = vrot.slane %v1364_v12, 2  ;;  %v553_v43 = vrot.slane %v1364_v12, 3 }
  0xb1   :  { %v331_v18 = vpop.f32.mrf.mxu1  ;;  %1129 = vmatpush.msk.msra.mxu3 %vm534_vm2, %v582_v9  ;;  %v434_v24 = vrot.slane %v296_v13, 1  ;;  %v491_v25 = vrot.slane %v296_v13, 2  ;;  %v548_v28 = vrot.slane %v296_v13, 3  ;;  %v442_v35 = vrot.slane %v1369_v17, 1 }
  0xb2   :  { %667 = vmatpush.msra.mxu2 %v579_v11  ;;  %v437_v26 = vrot.slane %v331_v18, 1  ;;  %v494_v29 = vrot.slane %v331_v18, 2  ;;  %v551_v30 = vrot.slane %v331_v18, 3  ;;  %v499_v36 = vrot.slane %v1369_v17, 2 }
  0xb3   :  { %690 = vmatpush.msra.mxu3 %v581_v10  ;;  %1128 = vmatmul.msk.f32.vlgmr.msra.gmra.mxu2 %vm599_vm5, %v1332_v14  ;;  %v470_v31 = vmax.f32 %v296_v13, %v434_v24  ;;  %v435_v33 = vsel %vm420_vm3, %v433_v15, %v434_v24  ;;  %v492_v34 = vsel %vm477_vm4, %v490_v16, %v491_v25  ;;  %v556_v39 = vrot.slane %v1369_v17, 3 }
  0xb4   :  { %v472_v32 = vmax.f32 %v331_v18, %v437_v26  ;;  %1130 = vmatmul.msk.f32.vlgmr.msra.gmra.mxu3 %vm599_vm5, %v1332_v14  ;;  %v469_v37 = vmax.f32 %v1345_v44, %v435_v33  ;;  %v438_v38 = vsel %vm420_vm3, %v436_v20, %v437_v26  ;;  %v549_v47 = vsel %vm534_vm2, %v547_v19, %v548_v28 }
  0xb5   :  { %v527_v40 = vmax.f32 %v470_v31, %v491_v25  ;;  %v471_v42 = vmax.f32 %v1349_v50, %v438_v38  ;;  %v495_v48 = vsel %vm477_vm4, %v493_v21, %v494_v29  ;;  %v552_v57 = vsel %vm534_vm2, %v550_v22, %v551_v30 }
  0xb6   :  { %v529_v41 = vmax.f32 %v472_v32, %v494_v29  ;;  %v526_v46 = vmax.f32 %v469_v37, %v492_v34 }
  0xb7   :  { %v366_v45 = vpop.f32.mrf.mxu2  ;;  %v584_v49 = vmax.f32 %v527_v40, %v548_v28  ;;  %v528_v60 = vmax.f32 %v471_v42, %v495_v48 }
  0xb8   :  { %v586_v51 = vmax.f32 %v529_v41, %v551_v30  ;;  %v401_v52 = vpop.f32.mrf.mxu3  ;;  %v440_v44 = vrot.slane %v366_v45, 1  ;;  %v497_v53 = vrot.slane %v366_v45, 2  ;;  %v554_v50 = vrot.slane %v366_v45, 3 }
  0xb9   :  { %v443_v54 = vrot.slane %v401_v52, 1  ;;  %v500_v55 = vrot.slane %v401_v52, 2  ;;  %v557_v56 = vrot.slane %v401_v52, 3  ;;  %1131 = vmatpush.msk.msrb.mxu0 %vm534_vm2, %v584_v49  ;;  %v583_v59 = vmax.f32 %v526_v46, %v549_v47 }
  0xba   :  { %v474_v58 = vmax.f32 %v366_v45, %v440_v44  ;;  %1133 = vmatpush.msk.msrb.mxu1 %vm534_vm2, %v586_v51  ;;  %v585_v1 = vmax.f32 %v528_v60, %v552_v57  ;;  %v441_v3 = vsel %vm420_vm3, %v439_v23, %v440_v44  ;;  %v498_v6 = vsel %vm477_vm4, %v496_v27, %v497_v53 }
  0xbb   :  { %v476_v61 = vmax.f32 %v401_v52, %v443_v54  ;;  %v444_v62 = vsel %vm420_vm3, %v442_v35, %v443_v54  ;;  %v501_v63 = vsel %vm477_vm4, %v499_v36, %v500_v55  ;;  %713 = vmatpush.msrb.mxu0 %v583_v59  ;;  %v558_v5 = vsel %vm534_vm2, %v556_v39, %v557_v56 }
  0xbc   :  { %v531_v0 = vmax.f32 %v474_v58, %v497_v53  ;;  %v475_v2 = vmax.f32 %v1369_v17, %v444_v62  ;;  %1132 = vmatmul.msk.f32.vlgmr.msrb.gmra.mxu0 %vm599_vm5, %v1332_v14  ;;  %v473_v7 = vmax.f32 %v1364_v12, %v441_v3  ;;  %736 = vmatpush.msrb.mxu1 %v585_v1 }
  0xbd   :  { %v533_v4 = vmax.f32 %v476_v61, %v500_v55  ;;  %v555_v11 = vsel %vm534_vm2, %v553_v43, %v554_v50  ;;  %1139 = vmatpush.xpose.msk.msra.mxu0 %vm599_vm5, %v1332_v14  ;;  %1134 = vmatmul.msk.f32.vlgmr.msrb.gmra.mxu1 %vm599_vm5, %v1332_v14 }
  0xbe   :  { %v588_v8 = vmax.f32 %v531_v0, %v554_v50  ;;  %v532_v9 = vmax.f32 %v475_v2, %v501_v63  ;;  %v530_v10 = vmax.f32 %v473_v7, %v498_v6  ;;  %1141 = vmatpush.xpose.msk.msra.mxu1 %vm599_vm5, %v1332_v14 }
  0xbf   :  { %v590_v13 = vmax.f32 %v533_v4, %v557_v56 }
  0xc0   :  { %v589_v15 = vmax.f32 %v532_v9, %v558_v5  ;;  %1135 = vmatpush.msk.msrb.mxu2 %vm534_vm2, %v588_v8  ;;  %v587_v12 = vmax.f32 %v530_v10, %v555_v11 }
  0xc1   :  { %1147 = vmatpush.xpose.msk.msrb.mxu0 %vm599_vm5, %v1332_v14  ;;  %1137 = vmatpush.msk.msrb.mxu3 %vm534_vm2, %v590_v13 }
  0xc2   :  { %1149 = vmatpush.xpose.msk.msrb.mxu1 %vm599_vm5, %v1332_v14  ;;  %759 = vmatpush.msrb.mxu2 %v587_v12 }
  0xc3   :  { %782 = vmatpush.msrb.mxu3 %v589_v15  ;;  %1136 = vmatmul.msk.f32.vlgmr.msrb.gmra.mxu2 %vm599_vm5, %v1332_v14 }
  0xc4   :  { %1138 = vmatmul.msk.f32.vlgmr.msrb.gmra.mxu3 %vm599_vm5, %v1332_v14  ;;  %1143 = vmatpush.xpose.msk.msra.mxu2 %vm599_vm5, %v1332_v14 }
  0xc5   :  { %1145 = vmatpush.xpose.msk.msra.mxu3 %vm599_vm5, %v1332_v14 }
  0xc8   :  { %1151 = vmatpush.xpose.msk.msrb.mxu2 %vm599_vm5, %v1332_v14 }
  0xc9   :  { %1153 = vmatpush.xpose.msk.msrb.mxu3 %vm599_vm5, %v1332_v14 }
 0x129   :  { %v623_v16 = vpop.f32.mrf.mxu0 }
 0x12a   :  { %795 = vrot.lane.b32.xlu0 %v623_v16, %s1240_s0  ;;  %v646_v17 = vpop.f32.mrf.mxu1 }
 0x12b   :  { %829 = vrot.lane.b32.xlu2 %v646_v17, %s1241_s1  ;;  %797 = vrot.lane.b32.xlu1 %v646_v17, %s1240_s0 }
 0x132   :  { %861 = vrot.lane.b32.xlu0 %v646_v17, %s1242_s23 }
 0x133   :  { %859 = vrot.lane.b32.xlu2 %v623_v16, %s1242_s23  ;;  %827 = vrot.lane.b32.xlu1 %v623_v16, %s1241_s1 }
 0x136   :  { %v669_v18 = vpop.f32.mrf.mxu2 }
 0x137   :  { %v692_v19 = vpop.f32.mrf.mxu3 }
 0x139   :  { %v1430_v14 = vpop.f32.mrf.mxu0 }
 0x13a   :  { %799 = vrot.lane.b32.xlu0 %v669_v18, %s1240_s0  ;;  %v1432_v20 = vpop.f32.mrf.mxu1 }
 0x13b   :  { %863 = vrot.lane.b32.xlu2 %v669_v18, %s1242_s23  ;;  %831 = vrot.lane.b32.xlu1 %v669_v18, %s1241_s1 }
 0x142   :  { %801 = vrot.lane.b32.xlu0 %v692_v19, %s1240_s0 }
 0x143   :  { %865 = vrot.lane.b32.xlu2 %v692_v19, %s1242_s23  ;;  %833 = vrot.lane.b32.xlu1 %v692_v19, %s1241_s1 }
 0x146   :  { %v761_v22 = vpop.f32.mrf.mxu2 }
 0x147   :  { %v784_v21 = vpop.f32.mrf.mxu3 }
 0x14a   :  { %803 = vrot.lane.b32.xlu0 %v1430_v14, %s1240_s0 }
 0x14b   :  { %805 = vrot.lane.b32.xlu1 %v1432_v20, %s1240_s0  ;;  %835 = vrot.lane.b32.xlu2 %v1430_v14, %s1241_s1 }
 0x152   :  { %809 = vrot.lane.b32.xlu0 %v784_v21, %s1240_s0 }
 0x153   :  { %841 = vrot.lane.b32.xlu1 %v784_v21, %s1241_s1  ;;  %807 = vrot.lane.b32.xlu2 %v761_v22, %s1240_s0 }
 0x15a   :  { %839 = vrot.lane.b32.xlu0 %v761_v22, %s1241_s1 }
 0x15b   :  { %871 = vrot.lane.b32.xlu1 %v761_v22, %s1242_s23  ;;  %873 = vrot.lane.b32.xlu2 %v784_v21, %s1242_s23 }
 0x162   :  { %837 = vrot.lane.b32.xlu0 %v1432_v20, %s1241_s1 }
 0x163   :  { %867 = vrot.lane.b32.xlu1 %v1430_v14, %s1242_s23  ;;  %869 = vrot.lane.b32.xlu2 %v1432_v20, %s1242_s23 }
 0x185   :  { %v830_v23 = vpop.permute.xlu2 %829 }
 0x18d   :  { %v860_v24 = vpop.permute.xlu2 %859 }
 0x195   :  { %v864_v28 = vpop.permute.xlu2 %863 }
 0x19c   :  { %v796_v25 = vpop.permute.xlu0 %795 }
 0x19d   :  { %v798_v26 = vpop.permute.xlu1 %797  ;;  %v819_v32 = vmax.f32 %v623_v16, %v796_v25  ;;  %v866_v36 = vpop.permute.xlu2 %865 }
 0x19e   :  { %v820_v27 = vmax.f32 %v646_v17, %v798_v26 }
 0x1a0   :  { %v852_v29 = vmax.f32 %v820_v27, %v830_v23 }
 0x1a4   :  { %v862_v30 = vpop.permute.xlu0 %861 }
 0x1a5   :  { %v884_v31 = vmax.f32 %v852_v29, %v862_v30  ;;  %v828_v33 = vpop.permute.xlu1 %827  ;;  %v836_v43 = vpop.permute.xlu2 %835 }
 0x1a6   :  { %v851_v34 = vmax.f32 %v819_v32, %v828_v33 }
 0x1a7   :  { %1142 = vmatmul.msk.f32.vlgmr.msra.gmra.mxu1 %vm599_vm5, %v884_v31 }
 0x1a8   :  { %v883_v35 = vmax.f32 %v851_v34, %v860_v24 }
 0x1aa   :  { %1140 = vmatmul.msk.f32.vlgmr.msra.gmra.mxu0 %vm599_vm5, %v883_v35 }
 0x1ac   :  { %v800_v37 = vpop.permute.xlu0 %799 }
 0x1ad   :  { %v821_v38 = vmax.f32 %v669_v18, %v800_v37  ;;  %v832_v39 = vpop.permute.xlu1 %831  ;;  %v808_v51 = vpop.permute.xlu2 %807 }
 0x1ae   :  { %v825_v58 = vmax.f32 %v761_v22, %v808_v51 }
 0x1af   :  { %v853_v40 = vmax.f32 %v821_v38, %v832_v39 }
 0x1b1   :  { %v885_v41 = vmax.f32 %v853_v40, %v864_v28 }
 0x1b3   :  { %1144 = vmatmul.msk.f32.vlgmr.msra.gmra.mxu2 %vm599_vm5, %v885_v41 }
 0x1b4   :  { %v802_v42 = vpop.permute.xlu0 %801 }
 0x1b5   :  { %v822_v45 = vmax.f32 %v692_v19, %v802_v42  ;;  %v834_v46 = vpop.permute.xlu1 %833  ;;  %v874_v56 = vpop.permute.xlu2 %873 }
 0x1b7   :  { %v854_v47 = vmax.f32 %v822_v45, %v834_v46 }
 0x1b9   :  { %v886_v48 = vmax.f32 %v854_v47, %v866_v36 }
 0x1bb   :  { %1146 = vmatmul.msk.f32.vlgmr.msra.gmra.mxu3 %vm599_vm5, %v886_v48 }
 0x1bc   :  { %v804_v49 = vpop.permute.xlu0 %803 }
 0x1bd   :  { %v806_v52 = vpop.permute.xlu1 %805  ;;  %v823_v62 = vmax.f32 %v1430_v14, %v804_v49  ;;  %v870_v2 = vpop.permute.xlu2 %869 }
 0x1be   :  { %v824_v63 = vmax.f32 %v1432_v20, %v806_v52 }
 0x1bf   :  { %v855_v3 = vmax.f32 %v823_v62, %v836_v43 }
 0x1c4   :  { %v810_v44 = vpop.permute.xlu0 %809 }
 0x1c5   :  { %v826_v53 = vmax.f32 %v784_v21, %v810_v44  ;;  %v842_v54 = vpop.permute.xlu1 %841 }
 0x1c7   :  { %v858_v55 = vmax.f32 %v826_v53, %v842_v54 }
 0x1c9   :  { %v890_v57 = vmax.f32 %v858_v55, %v874_v56 }
 0x1cb   :  { %1154 = vmatmul.msk.f32.vlgmr.msrb.gmra.mxu3 %vm599_vm5, %v890_v57 }
 0x1cc   :  { %v840_v50 = vpop.permute.xlu0 %839 }
 0x1cd   :  { %v857_v59 = vmax.f32 %v825_v58, %v840_v50  ;;  %v872_v60 = vpop.permute.xlu1 %871 }
 0x1cf   :  { %v889_v61 = vmax.f32 %v857_v59, %v872_v60 }
 0x1d1   :  { %1152 = vmatmul.msk.f32.vlgmr.msrb.gmra.mxu2 %vm599_vm5, %v889_v61 }
 0x1d4   :  { %v838_v0 = vpop.permute.xlu0 %837 }
 0x1d5   :  { %v856_v1 = vmax.f32 %v824_v63, %v838_v0  ;;  %v868_v4 = vpop.permute.xlu1 %867 }
 0x1d6   :  { %v887_v7 = vmax.f32 %v855_v3, %v868_v4 }
 0x1d7   :  { %v888_v5 = vmax.f32 %v856_v1, %v870_v2 }
 0x1d8   :  { %1148 = vmatmul.msk.f32.vlgmr.msrb.gmra.mxu0 %vm599_vm5, %v887_v7 }
 0x1d9   :  { %1150 = vmatmul.msk.f32.vlgmr.msrb.gmra.mxu1 %vm599_vm5, %v888_v5 }
 0x224   :  { %v934_v6 = vpop.f32.mrf.mxu1 }
 0x225   :  { %1077 = vst.msk [vmem:[%s1484_s2 + $0x8] sm:$0x7f] %vm1075_vm6, %v934_v6 }
 0x227   :  { %v911_v8 = vpop.f32.mrf.mxu0 }
 0x228   :  { %1076 = vst.msk [vmem:[%s1484_s2] sm:$0x7f] %vm1075_vm6, %v911_v8 }
 0x236   :  { %v957_v9 = vpop.f32.mrf.mxu2 }
 0x237   :  { %1078 = vst.msk [vmem:[%s1484_s2 + $0x10] sm:$0x7f] %vm1075_vm6, %v957_v9 }
 0x23e   :  { %v980_v11 = vpop.f32.mrf.mxu3 }
 0x23f   :  { %1079 = vst.msk [vmem:[%s1484_s2 + $0x18] sm:$0x7f] %vm1075_vm6, %v980_v11 }
 0x24e   :  { %v1072_v13 = vpop.f32.mrf.mxu3 }
 0x24f   :  { %1083 = vst.msk [vmem:[%s1484_s2 + $0x38] sm:$0x7f] %vm1075_vm6, %v1072_v13 }
 0x254   :  { %v1049_v10 = vpop.f32.mrf.mxu2 }
 0x255   :  { %1082 = vst.msk [vmem:[%s1484_s2 + $0x30] sm:$0x7f] %vm1075_vm6, %v1049_v10  ;;  %v1003_v12 = vpop.f32.mrf.mxu0 }
 0x256   :  { %v1026_v15 = vpop.f32.mrf.mxu1  ;;  %1080 = vst.msk [vmem:[%s1484_s2 + $0x20] sm:$0x7f] %vm1075_vm6, %v1003_v12 }
 0x257   :  { %1081 = vst.msk [vmem:[%s1484_s2 + $0x28] sm:$0x7f] %vm1075_vm6, %v1026_v15 }
 0x258   :  { %1088 = vsyncpa [#allocation3], 1 }
 0x259   :  { %1089 = vsyncpa [#allocation5], 1 }

</bundles_post_ra>
